<compile_context>
chip_gen: v6e
topology: v6e:2x2x1
jax: 0.10.0
libtpu: 0.0.40
codegen_flags: <defaults>
</compile_context>

<pallas_src>
import functools

import jax
import jax.numpy as jnp
from jax.experimental import pallas as pl
from jax.experimental.pallas import tpu as pltpu

LANE = 128       # vreg lane width: feature dims padded to a multiple of this
SUBLANE = 8      # sublane granularity: batch tiles are multiples of this
TILE_M = 512     # max rows per grid step (v6e/v5e roofline sweet spot; VMEM-cheap at P=128)

VMEM_BUDGET_BYTES = 28 * 1024 * 1024   # stay under v7x 32 MiB scoped default with headroom
VMEM_LIMIT_BYTES = 32 * 1024 * 1024    # explicit scoped-VMEM request (safe on v5e/v6e/v7x)


def _round_up(x, m):
    return (x + m - 1) // m * m


def _resident_spec(block_shape, index_map):
    """Grid-invariant block (constant index_map): DMA'd once, kept VMEM-resident.
    Single-buffered (Buffered(1)) so the default double-buffer doesn't waste VMEM."""
    if hasattr(pl, "Buffered"):
        try:
            return pl.BlockSpec(block_shape, index_map, pipeline_mode=pl.Buffered(1))
        except TypeError:   # older jax without pipeline_mode kwarg
            pass
    return pl.BlockSpec(block_shape, index_map)


def _choose_tile(batch):
    """Pick (tile_m, m_pad): minimize pad waste, keep >=2 grid steps when batch > 8
    (so v7x's 2 TensorCores both get work via dimension_semantics=('parallel',)),
    and keep tiles large (per-step overhead ~0.35us)."""
    m8 = _round_up(batch, SUBLANE)
    if m8 <= SUBLANE:
        return SUBLANE, m8                          # single tiny tile, grid (1,)
    if m8 <= 2 * TILE_M:
        tile = _round_up(pl.cdiv(m8, 2), SUBLANE)   # exactly 2 steps, <8 rows of pad
        return tile, _round_up(m8, tile)
    # Large batch: ladder search trading pad waste vs. per-step overhead (~32 rows eq.).
    best_tile, best_cost = SUBLANE, None
    for t in (1024, 512, 384, 256, 192, 128, 96, 64, 32, 16, 8):
        if t > TILE_M:
            continue
        padded = _round_up(m8, t)
        cost = padded + 32 * (padded // t)
        if best_cost is None or cost < best_cost:
            best_tile, best_cost = t, cost
    return best_tile, _round_up(m8, best_tile)


def _fused_mlp_kernel(x_ref, w_ref, b_ref, wh_ref, bh_ref, o_ref, *, num_hidden: int):
    """Whole MLP on one VMEM-resident activation tile.

    x_ref : (tile_m, P)      bf16 activation tile (P = lane-padded hidden/input width)
    w_ref : (L, P, P)        bf16 hidden weights, stacked, zero-padded, VMEM-resident
    b_ref : (L, 1, P)        f32  hidden biases
    wh_ref: (P, P_out)       bf16 head weight (own lane padding)
    bh_ref: (1, P_out)       f32  head bias
    o_ref : (tile_m, P_out)  f32  lane-dense output tile
    Static Python unroll over layers (num_hidden is small & fixed).
    """
    h = x_ref[...]                                            # bf16
    for layer in range(num_hidden):
        acc = jnp.dot(h, w_ref[layer], preferred_element_type=jnp.float32)
        acc = jnp.maximum(acc + b_ref[layer], 0.0)            # fused bias + ReLU (f32, VPU)
        h = acc.astype(jnp.bfloat16)                          # bf16 back into the MXU
    y = jnp.dot(h, wh_ref[...], preferred_element_type=jnp.float32)
    o_ref[...] = (y + bh_ref[...]).astype(o_ref.dtype)        # head: no activation


def fused_mlp(x_padded, w_stack, b_stack, w_head, b_head, *, num_hidden: int, tile_m: int):
    """x_padded: (M_pad, P) bf16, w_stack: (L,P,P) bf16, b_stack: (L,1,P) f32,
    w_head: (P, P_out) bf16, b_head: (1, P_out) f32 -> (M_pad, P_out) f32."""
    M, P = x_padded.shape
    L = w_stack.shape[0]
    P_out = w_head.shape[-1]
    assert M % tile_m == 0 and tile_m % SUBLANE == 0
    assert P % LANE == 0 and P_out % LANE == 0

    # VMEM budget: resident weight stack (single-buffered) + double-buffered act/out
    # tiles + rough f32 temporaries.  If this trips, fall back to a per-layer
    # K/N-tiled pipeline (pltpu.emit_pipeline) instead of the all-layers-resident stack.
    resident = (w_stack.size * 2 + b_stack.size * 4 + w_head.size * 2 + b_head.size * 4)
    pipelined = 2 * tile_m * P * 2 + 2 * tile_m * P_out * 4
    scratch = 2 * tile_m * P * 4
    vmem_est = resident + pipelined + scratch
    assert vmem_est <= VMEM_BUDGET_BYTES, (
        f"VMEM estimate {vmem_est / 2**20:.1f} MiB exceeds "
        f"{VMEM_BUDGET_BYTES / 2**20:.0f} MiB budget (v7x has 64 MiB physical / 32 MiB "
        "scoped default); use a per-layer tiled pipeline for this hidden_dim.")

    kernel = functools.partial(_fused_mlp_kernel, num_hidden=num_hidden)
    return pl.pallas_call(
        kernel,
        out_shape=jax.ShapeDtypeStruct((M, P_out), jnp.float32),
        grid=(M // tile_m,),
        in_specs=[
            pl.BlockSpec((tile_m, P), lambda i: (i, 0)),        # activation tile (pipelined)
            _resident_spec((L, P, P), lambda i: (0, 0, 0)),     # hidden weights: VMEM-resident
            _resident_spec((L, 1, P), lambda i: (0, 0, 0)),     # hidden biases
            _resident_spec((P, P_out), lambda i: (0, 0)),       # head weight
            _resident_spec((1, P_out), lambda i: (0, 0)),       # head bias
        ],
        out_specs=pl.BlockSpec((tile_m, P_out), lambda i: (i, 0)),
        compiler_params=pltpu.CompilerParams(
            dimension_semantics=("parallel",),                  # megacore / v7x 2-TC
            vmem_limit_bytes=VMEM_LIMIT_BYTES),
    )(x_padded, w_stack, b_stack, w_head, b_head)


def init_standard_model_params(key, input_dim, hidden_dim, num_layers, output_dim):
    """Deterministic synthetic init mirroring PyTorch nn.Linear shapes.
    Each layer stored as weight (in, out) [transposed vs PyTorch] and bias (out,)."""
    params = []
    dims = [(input_dim, hidden_dim)] + [(hidden_dim, hidden_dim)] * (num_layers - 1)
    dims = dims + [(hidden_dim, output_dim)]
    for (fan_in, fan_out) in dims:
        key, kw, kb = jax.random.split(key, 3)
        bound = 1.0 / jnp.sqrt(jnp.array(fan_in, jnp.float32))
        w = jax.random.uniform(kw, (fan_in, fan_out), jnp.float32, -bound, bound)
        b = jax.random.uniform(kb, (fan_out,), jnp.float32, -bound, bound)
        params.append((w, b))
    return params


def pack_params(params, p_feat, p_out):
    """Zero-pad & stack hidden layers to (L, p_feat, p_feat) bf16 / (L, 1, p_feat) f32;
    head gets its own lane padding (p_feat, p_out) bf16 / (1, p_out) f32.
    Zero padding is math-preserving: padded columns stay zero through matmul+bias+ReLU."""
    hidden, (w_h, b_h) = params[:-1], params[-1]
    ws, bs = [], []
    for (w, b) in hidden:
        k, n = w.shape
        wp = jnp.zeros((p_feat, p_feat), jnp.float32).at[:k, :n].set(w)
        bp = jnp.zeros((1, p_feat), jnp.float32).at[0, :n].set(b)
        ws.append(wp.astype(jnp.bfloat16))
        bs.append(bp)
    k, n = w_h.shape
    w_head = jnp.zeros((p_feat, p_out), jnp.float32).at[:k, :n].set(w_h).astype(jnp.bfloat16)
    b_head = jnp.zeros((1, p_out), jnp.float32).at[0, :n].set(b_h)
    return jnp.stack(ws), jnp.stack(bs), w_head, b_head


def standard_model_forward(x, w_stack, b_stack, w_head, b_head, *, output_dim):
    """Pads batch/features (bf16), runs the single fused kernel, slices the real output."""
    batch, in_dim = x.shape
    P = w_stack.shape[-1]
    num_hidden = w_stack.shape[0]
    tile, m_pad = _choose_tile(batch)
    xp = jnp.zeros((m_pad, P), jnp.bfloat16).at[:batch, :in_dim].set(x.astype(jnp.bfloat16))
    yp = fused_mlp(xp, w_stack, b_stack, w_head, b_head,
                   num_hidden=num_hidden, tile_m=tile)
    return yp[:batch, :output_dim]


if __name__ == "__main__":
    key = jax.random.PRNGKey(0)
    batch = 8
    input_dim = 32
    hidden_dim = 32
    num_layers = 3
    output_dim = 8

    key, kx, kp = jax.random.split(key, 3)
    x = jax.random.normal(kx, (batch, input_dim), jnp.float32)
    params = init_standard_model_params(kp, input_dim, hidden_dim, num_layers, output_dim)

    p_feat = _round_up(max(input_dim, hidden_dim), LANE)
    p_out = _round_up(output_dim, LANE)
    w_stack, b_stack, w_head, b_head = pack_params(params, p_feat, p_out)

    out = standard_model_forward(x, w_stack, b_stack, w_head, b_head, output_dim=output_dim)
    jax.block_until_ready(out)
    assert out.shape == (batch, output_dim)

    # Reference check in plain JAX (f32, unpadded). Kernel feeds the MXU bf16 operands
    # (f32 accumulate), so the tolerance is loosened accordingly.
    ref = x
    for (w, b) in params[:-1]:
        ref = jnp.maximum(ref @ w + b, 0.0)
    ref = ref @ params[-1][0] + params[-1][1]
    max_err = float(jnp.max(jnp.abs(out - ref)))
    assert jnp.allclose(out, ref, atol=5e-2, rtol=5e-2), f"max abs err {max_err}"

    print("KERNEL_OK")
</pallas_src>

<mosaic_0001>
module attributes {stable_mosaic.version = 11 : i64} {
  func.func @_fused_mlp_kernel(%arg0: i32, %arg1: memref<8x128xbf16, #tpu.memory_space<vmem>>, %arg2: memref<3x128x128xbf16, #tpu.memory_space<vmem>>, %arg3: memref<3x1x128xf32, #tpu.memory_space<vmem>>, %arg4: memref<128x128xbf16, #tpu.memory_space<vmem>>, %arg5: memref<1x128xf32, #tpu.memory_space<vmem>>, %arg6: memref<8x128xf32, #tpu.memory_space<vmem>>) attributes {dimension_semantics = [#tpu.dimension_semantics<parallel>], iteration_bounds = array<i64: 1>, scalar_prefetch = 0 : i64, scratch_operands = 0 : i64, tpu.core_type = #tpu.core_type<tc>, window_params = [{transform_indices = @transform_0, window_bounds = array<i64: 8, 128>}, {pipeline_mode = #tpu.pipeline_mode<synchronous>, transform_indices = @transform_1, window_bounds = array<i64: 3, 128, 128>}, {pipeline_mode = #tpu.pipeline_mode<synchronous>, transform_indices = @transform_2, window_bounds = array<i64: 3, 1, 128>}, {pipeline_mode = #tpu.pipeline_mode<synchronous>, transform_indices = @transform_3, window_bounds = array<i64: 128, 128>}, {pipeline_mode = #tpu.pipeline_mode<synchronous>, transform_indices = @transform_4, window_bounds = array<i64: 1, 128>}, {transform_indices = @transform_5, window_bounds = array<i64: 8, 128>}]} {
    %c0 = arith.constant 0 : index
    %c0_0 = arith.constant 0 : index
    %0 = vector.load %arg1[%c0, %c0_0] : memref<8x128xbf16, #tpu.memory_space<vmem>>, vector<8x128xbf16>
    %c0_1 = arith.constant 0 : index
    %c0_2 = arith.constant 0 : index
    %c0_3 = arith.constant 0 : index
    %1 = vector.load %arg2[%c0_1, %c0_2, %c0_3] : memref<3x128x128xbf16, #tpu.memory_space<vmem>>, vector<1x128x128xbf16>
    %2 = vector.shape_cast %1 : vector<1x128x128xbf16> to vector<128x128xbf16>
    %cst = arith.constant dense<0.000000e+00> : vector<8x128xf32>
    %3 = tpu.matmul %0, %2, %cst {dimension_numbers = #tpu.dot_dimension_numbers<[1], [0], [0], [1], [0, 0, 1, 1], [], []>} : vector<8x128xbf16>, vector<128x128xbf16>, vector<8x128xf32> -> vector<8x128xf32>
    %c0_4 = arith.constant 0 : index
    %c0_5 = arith.constant 0 : index
    %c0_6 = arith.constant 0 : index
    %4 = vector.load %arg3[%c0_4, %c0_5, %c0_6] : memref<3x1x128xf32, #tpu.memory_space<vmem>>, vector<1x1x128xf32>
    %5 = vector.shape_cast %4 : vector<1x1x128xf32> to vector<1x128xf32>
    %6 = vector.broadcast %5 : vector<1x128xf32> to vector<8x128xf32>
    %7 = arith.addf %3, %6 : vector<8x128xf32>
    %cst_7 = arith.constant 0.000000e+00 : f32
    %8 = vector.broadcast %cst_7 : f32 to vector<8x128xf32>
    %9 = arith.maximumf %7, %8 : vector<8x128xf32>
    %10 = arith.truncf %9 : vector<8x128xf32> to vector<8x128xbf16>
    %c1 = arith.constant 1 : index
    %c0_8 = arith.constant 0 : index
    %c0_9 = arith.constant 0 : index
    %11 = vector.load %arg2[%c1, %c0_8, %c0_9] : memref<3x128x128xbf16, #tpu.memory_space<vmem>>, vector<1x128x128xbf16>
    %12 = vector.shape_cast %11 : vector<1x128x128xbf16> to vector<128x128xbf16>
    %cst_10 = arith.constant dense<0.000000e+00> : vector<8x128xf32>
    %13 = tpu.matmul %10, %12, %cst_10 {dimension_numbers = #tpu.dot_dimension_numbers<[1], [0], [0], [1], [0, 0, 1, 1], [], []>} : vector<8x128xbf16>, vector<128x128xbf16>, vector<8x128xf32> -> vector<8x128xf32>
    %c1_11 = arith.constant 1 : index
    %c0_12 = arith.constant 0 : index
    %c0_13 = arith.constant 0 : index
    %14 = vector.load %arg3[%c1_11, %c0_12, %c0_13] : memref<3x1x128xf32, #tpu.memory_space<vmem>>, vector<1x1x128xf32>
    %15 = vector.shape_cast %14 : vector<1x1x128xf32> to vector<1x128xf32>
    %16 = vector.broadcast %15 : vector<1x128xf32> to vector<8x128xf32>
    %17 = arith.addf %13, %16 : vector<8x128xf32>
    %cst_14 = arith.constant 0.000000e+00 : f32
    %18 = vector.broadcast %cst_14 : f32 to vector<8x128xf32>
    %19 = arith.maximumf %17, %18 : vector<8x128xf32>
    %20 = arith.truncf %19 : vector<8x128xf32> to vector<8x128xbf16>
    %c2 = arith.constant 2 : index
    %c0_15 = arith.constant 0 : index
    %c0_16 = arith.constant 0 : index
    %21 = vector.load %arg2[%c2, %c0_15, %c0_16] : memref<3x128x128xbf16, #tpu.memory_space<vmem>>, vector<1x128x128xbf16>
    %22 = vector.shape_cast %21 : vector<1x128x128xbf16> to vector<128x128xbf16>
    %cst_17 = arith.constant dense<0.000000e+00> : vector<8x128xf32>
    %23 = tpu.matmul %20, %22, %cst_17 {dimension_numbers = #tpu.dot_dimension_numbers<[1], [0], [0], [1], [0, 0, 1, 1], [], []>} : vector<8x128xbf16>, vector<128x128xbf16>, vector<8x128xf32> -> vector<8x128xf32>
    %c2_18 = arith.constant 2 : index
    %c0_19 = arith.constant 0 : index
    %c0_20 = arith.constant 0 : index
    %24 = vector.load %arg3[%c2_18, %c0_19, %c0_20] : memref<3x1x128xf32, #tpu.memory_space<vmem>>, vector<1x1x128xf32>
    %25 = vector.shape_cast %24 : vector<1x1x128xf32> to vector<1x128xf32>
    %26 = vector.broadcast %25 : vector<1x128xf32> to vector<8x128xf32>
    %27 = arith.addf %23, %26 : vector<8x128xf32>
    %cst_21 = arith.constant 0.000000e+00 : f32
    %28 = vector.broadcast %cst_21 : f32 to vector<8x128xf32>
    %29 = arith.maximumf %27, %28 : vector<8x128xf32>
    %30 = arith.truncf %29 : vector<8x128xf32> to vector<8x128xbf16>
    %c0_22 = arith.constant 0 : index
    %c0_23 = arith.constant 0 : index
    %31 = vector.load %arg4[%c0_22, %c0_23] : memref<128x128xbf16, #tpu.memory_space<vmem>>, vector<128x128xbf16>
    %cst_24 = arith.constant dense<0.000000e+00> : vector<8x128xf32>
    %32 = tpu.matmul %30, %31, %cst_24 {dimension_numbers = #tpu.dot_dimension_numbers<[1], [0], [0], [1], [0, 0, 1, 1], [], []>} : vector<8x128xbf16>, vector<128x128xbf16>, vector<8x128xf32> -> vector<8x128xf32>
    %c0_25 = arith.constant 0 : index
    %c0_26 = arith.constant 0 : index
    %33 = vector.load %arg5[%c0_25, %c0_26] : memref<1x128xf32, #tpu.memory_space<vmem>>, vector<1x128xf32>
    %34 = vector.broadcast %33 : vector<1x128xf32> to vector<8x128xf32>
    %35 = arith.addf %32, %34 : vector<8x128xf32>
    %c0_27 = arith.constant 0 : index
    %c0_28 = arith.constant 0 : index
    %36 = vector.load %arg6[%c0_27, %c0_28] : memref<8x128xf32, #tpu.memory_space<vmem>>, vector<8x128xf32>
    tpu.vector_store %arg6[%c0_27, %c0_28], %35 {strides = array<i32>} : memref<8x128xf32, #tpu.memory_space<vmem>>, vector<8x128xf32>,
    return
  }
  func.func @transform_0(%arg0: i32) -> (i32, i32) {
    %c0_i32 = arith.constant 0 : i32
    %c0_i32_0 = arith.constant 0 : i32
    return %arg0, %c0_i32 : i32, i32
  }
  func.func @transform_1(%arg0: i32) -> (i32, i32, i32) {
    %c0_i32 = arith.constant 0 : i32
    %c0_i32_0 = arith.constant 0 : i32
    %c0_i32_1 = arith.constant 0 : i32
    %c0_i32_2 = arith.constant 0 : i32
    return %c0_i32, %c0_i32_0, %c0_i32_1 : i32, i32, i32
  }
  func.func @transform_2(%arg0: i32) -> (i32, i32, i32) {
    %c0_i32 = arith.constant 0 : i32
    %c0_i32_0 = arith.constant 0 : i32
    %c0_i32_1 = arith.constant 0 : i32
    %c0_i32_2 = arith.constant 0 : i32
    return %c0_i32, %c0_i32_0, %c0_i32_1 : i32, i32, i32
  }
  func.func @transform_3(%arg0: i32) -> (i32, i32) {
    %c0_i32 = arith.constant 0 : i32
    %c0_i32_0 = arith.constant 0 : i32
    %c0_i32_1 = arith.constant 0 : i32
    return %c0_i32, %c0_i32_0 : i32, i32
  }
  func.func @transform_4(%arg0: i32) -> (i32, i32) {
    %c0_i32 = arith.constant 0 : i32
    %c0_i32_0 = arith.constant 0 : i32
    %c0_i32_1 = arith.constant 0 : i32
    return %c0_i32, %c0_i32_0 : i32, i32
  }
  func.func @transform_5(%arg0: i32) -> (i32, i32) {
    %c0_i32 = arith.constant 0 : i32
    %c0_i32_0 = arith.constant 0 : i32
    return %arg0, %c0_i32 : i32, i32
  }
}

</mosaic_0001>

<bundles_post_ra>
// kernel: tpu_custom_call.1
= control target key start
LH: loop header
LB: loop body
LE: loop exit
PB: predicated region body
PF: predicated region fallthrough
CT: control target
= control target key end

     0   :  { %10 = vsyncpa [#allocation3], 0  ;;  %s915_s0 = inlined_call_operand.hbm [shape: bf16[8,128], index: 0, kind: input, shape index: {}]   ;;  %s916_s1 = inlined_call_operand.hbm [shape: bf16[3,128,128], index: 1, kind: input, shape index: {}]   ;;  %s917_s2 = inlined_call_operand.vmem [shape: f32[3,1,128], index: 2, kind: input, shape index: {}]   ;;  %s918_s3 = inlined_call_operand.hbm [shape: bf16[128,128], index: 3, kind: input, shape index: {}]   ;;  %s919_s4 = inlined_call_operand.vmem [shape: f32[1,128], index: 4, kind: input, shape index: {}]   ;;  %s920_s5 = inlined_call_operand.hbm [shape: f32[8,128], index: 5, kind: output, shape index: {}]  }
   0x1   :  { %11 = vsyncpa [#allocation6], 0 }
   0x2   :  { %12 = vsyncpa [#allocation4], 0  ;;  %s813_s18 = smov [#allocation5]  }
   0x3   :  { %s28_s19 = sshll.u32 %s813_s18, 4  ;;  %s29_s19 = int_to_ptr.vmem [resolvable:$true] %s28_s19 }
   0x4   :  { %s735_s20 = scalar_lea.vmem %s29_s19, 3072  ;;  %p740_p1 = scmp.lt.s32.totalorder %s29_s19, %s29_s19 }
   0x5   :  { %p736_p0 = scmp.ne.s32.totalorder %s29_s19, %s735_s20  ;;  %p741_p2 = scmp.lt.s32.totalorder %s735_s20, %s735_s20 }
   0x7   :  { %p742_p3 = por %p741_p2, %p740_p1 }
   0x9   :  { %p743_p4 = pnand %p742_p3, %p736_p0 }
   0xb   :  { %746 = shalt.err (!%p743_p4)
}
   0xc   :  { %s814_s21 = smov 64   ;;  %s815_s22 = smov 4  }
   0xd   :  { %34 = dma.hbm_to_vmem [thread:$0]  %s916_s1, 3072, %s29_s19, [#allocation6], %s814_s21, %s814_s21, %s815_s22  }
   0xe   :  { %s816_s25 = smov [#allocation2]   ;;  %s817_s27 = smov [#allocation7]  }
   0xf   :  { %s19_s26 = sshll.u32 %s816_s25, 4  ;;  %s42_s28 = sshll.u32 %s817_s27, 4  ;;  %s20_s26 = int_to_ptr.vmem [resolvable:$true] %s19_s26  ;;  %s43_s28 = int_to_ptr.vmem [resolvable:$true] %s42_s28 }
  0x10   :  { %s755_s29 = scalar_lea.vmem %s20_s26, 64  ;;  %p760_p6 = scmp.lt.s32.totalorder %s20_s26, %s20_s26 }
  0x11   :  { %p756_p5 = scmp.ne.s32.totalorder %s20_s26, %s755_s29  ;;  %p761_p7 = scmp.lt.s32.totalorder %s755_s29, %s755_s29 }
  0x13   :  { %p762_p8 = por %p761_p7, %p760_p6 }
  0x15   :  { %p763_p9 = pnand %p762_p8, %p756_p5 }
  0x17   :  { %766 = shalt.err (!%p763_p9)
}
  0x18   :  { %22 = dma.hbm_to_vmem [thread:$0]  %s915_s0, 64, %s20_s26, [#allocation3]  }
  0x19   :  { %s775_s7 = scalar_lea.vmem %s43_s28, 1024  ;;  %p780_p11 = scmp.lt.s32.totalorder %s43_s28, %s43_s28 }
  0x1a   :  { %p776_p10 = scmp.ne.s32.totalorder %s43_s28, %s775_s7  ;;  %p781_p12 = scmp.lt.s32.totalorder %s775_s7, %s775_s7 }
  0x1c   :  { %p782_p13 = por %p781_p12, %p780_p11 }
  0x1e   :  { %p783_p0 = pnand %p782_p13, %p776_p10 }
  0x20   :  { %786 = shalt.err (!%p783_p0)
}
  0x21   :  { %48 = dma.hbm_to_vmem [thread:$0]  %s918_s3, 1024, %s43_s28, [#allocation6], %s814_s21, %s814_s21, %s815_s22  }
  0x22   :  { %807 = dma.done.wait [#allocation3], 64  }
  0x23   :  { %808 = vsyncadd [#allocation3], 4294967232 }
  0x24   :  { %809 = dma.done.wait [#allocation6], 4096  }
  0x25   :  { %810 = vsyncadd [#allocation6], 4294963200  ;;  %v818_v0 = vmov 0.0   ;;  %vm819_vm0 = vmmov 0   ;;  %v695_v1 = vld [vmem:[#allocation5 + $0x38] sm:$0xff]   ;;  %v696_v2 = vld [vmem:[#allocation5 + $0x30] sm:$0xff]  }
  0x26   :  { %607 = vmatprep.subr.bf16.mxu0 %v818_v0  ;;  %623 = vmatprep.mubr.msk.bf16.mxu0 %vm819_vm0, %v818_v0  ;;  %v697_v3 = vld [vmem:[#allocation5 + $0x28] sm:$0xff]   ;;  %v703_v4 = vld [vmem:[#allocation5 + $0x78] sm:$0xff]   ;;  %v698_v5 = vld [vmem:[#allocation5 + $0x20] sm:$0xff]   ;;  %s820_s15 = smov [#allocation8]  }
  0x27   :  { %627 = vmatprep.subr.bf16.mxu1 %v818_v0  ;;  %643 = vmatprep.mubr.msk.bf16.mxu1 %vm819_vm0, %v818_v0  ;;  %v704_v6 = vld [vmem:[#allocation5 + $0x70] sm:$0xff]   ;;  %v699_v7 = vld [vmem:[#allocation5 + $0x18] sm:$0xff]   ;;  %v705_v8 = vld [vmem:[#allocation5 + $0x68] sm:$0xff]   ;;  %s523_s16 = sshll.u32 %s820_s15, 4  ;;  %s524_s16 = int_to_ptr.vmem [resolvable:$true] %s523_s16 }
  0x28   :  { %608 = vmatpush3.bf16.msra.mxu0 %v695_v1  ;;  %628 = vmatpush3.bf16.msra.mxu1 %v703_v4  ;;  %v700_v9 = vld [vmem:[#allocation5 + $0x10] sm:$0xff]   ;;  %v706_v10 = vld [vmem:[#allocation5 + $0x60] sm:$0xff]   ;;  %v701_v11 = vld [vmem:[#allocation5 + $0x8] sm:$0xff]   ;;  %p792_p2 = scmp.lt.s32.totalorder %s524_s16, %s524_s16 }
  0x29   :  { %609 = vmatprep.subr.bf16.mxu0 %v818_v0  ;;  %629 = vmatprep.subr.bf16.mxu1 %v818_v0  ;;  %v707_v12 = vld [vmem:[#allocation5 + $0x58] sm:$0xff]   ;;  %v702_v13 = vld [vmem:[#allocation5] sm:$0xff]   ;;  %v708_v14 = vld [vmem:[#allocation5 + $0x50] sm:$0xff]  }
  0x2a   :  { %v61_v15 = vld [vmem:[#allocation2] sm:$0xf]  ;;  %v709_v16 = vld [vmem:[#allocation5 + $0x48] sm:$0xff]   ;;  %v710_v17 = vld [vmem:[#allocation5 + $0x40] sm:$0xff]  }
  0x2b   :  { %v711_v18 = vld [vmem:[#allocation5 + $0xb8] sm:$0xff]   ;;  %v712_v19 = vld [vmem:[#allocation5 + $0xb0] sm:$0xff]   ;;  %v713_v20 = vld [vmem:[#allocation5 + $0xa8] sm:$0xff]  }
  0x2c   :  { %610 = vmatpush3.bf16.msra.mxu0 %v696_v2  ;;  %630 = vmatpush3.bf16.msra.mxu1 %v704_v6  ;;  %v714_v21 = vld [vmem:[#allocation5 + $0xa0] sm:$0xff]   ;;  %v715_v22 = vld [vmem:[#allocation5 + $0x98] sm:$0xff]   ;;  %v716_v23 = vld [vmem:[#allocation5 + $0x90] sm:$0xff]  }
  0x2d   :  { %611 = vmatprep.subr.bf16.mxu0 %v818_v0  ;;  %631 = vmatprep.subr.bf16.mxu1 %v818_v0  ;;  %v533_v24 = vld [vmem:[%s917_s2] ss:$0 sm:$0xff]  ;;  %v717_v32 = vld [vmem:[#allocation5 + $0x88] sm:$0xff]   ;;  %v718_v33 = vld [vmem:[#allocation5 + $0x80] sm:$0xff]  }
  0x2e   :  { %v719_v34 = vld [vmem:[#allocation7 + $0x38] sm:$0xff]   ;;  %v720_v35 = vld [vmem:[#allocation7 + $0x30] sm:$0xff]   ;;  %v721_v36 = vld [vmem:[#allocation7 + $0x28] sm:$0xff]  }
  0x2f   :  { %v722_v37 = vld [vmem:[#allocation7 + $0x20] sm:$0xff]   ;;  %v723_v38 = vld [vmem:[#allocation7 + $0x18] sm:$0xff]   ;;  %v724_v39 = vld [vmem:[#allocation7 + $0x10] sm:$0xff]  }
  0x30   :  { %612 = vmatpush3.bf16.msra.mxu0 %v697_v3  ;;  %632 = vmatpush3.bf16.msra.mxu1 %v705_v8  ;;  %v543_v40 = vld [vmem:[%s917_s2 + $0x1] ss:$0 sm:$0xff]  ;;  %v725_v48 = vld [vmem:[#allocation7 + $0x8] sm:$0xff]   ;;  %v726_v49 = vld [vmem:[#allocation7] sm:$0xff]  }
  0x31   :  { %613 = vmatprep.subr.bf16.mxu0 %v818_v0  ;;  %633 = vmatprep.subr.bf16.mxu1 %v818_v0  ;;  %v553_v50 = vld [vmem:[%s917_s2 + $0x2] ss:$0 sm:$0xff]  ;;  %v562_v58 = vld [vmem:[%s919_s4] ss:$0 sm:$0xff]  ;;  %s787_s2 = scalar_lea.vmem %s524_s16, 128 }
  0x32   :  { %p788_p1 = scmp.ne.s32.totalorder %s524_s16, %s787_s2  ;;  %p793_p3 = scmp.lt.s32.totalorder %s787_s2, %s787_s2 }
  0x34   :  { %614 = vmatpush3.bf16.msra.mxu0 %v698_v5  ;;  %634 = vmatpush3.bf16.msra.mxu1 %v706_v10  ;;  %p794_p4 = por %p793_p3, %p792_p2 }
  0x35   :  { %615 = vmatprep.subr.bf16.mxu0 %v818_v0  ;;  %635 = vmatprep.subr.bf16.mxu1 %v818_v0 }
  0x36   :  { %p795_p5 = pnand %p794_p4, %p788_p1 }
  0x38   :  { %616 = vmatpush3.bf16.msra.mxu0 %v699_v7  ;;  %636 = vmatpush3.bf16.msra.mxu1 %v707_v12 }
  0x39   :  { %617 = vmatprep.subr.bf16.mxu0 %v818_v0  ;;  %637 = vmatprep.subr.bf16.mxu1 %v818_v0 }
  0x3c   :  { %618 = vmatpush3.bf16.msra.mxu0 %v700_v9  ;;  %638 = vmatpush3.bf16.msra.mxu1 %v708_v14 }
  0x3d   :  { %619 = vmatprep.subr.bf16.mxu0 %v818_v0  ;;  %639 = vmatprep.subr.bf16.mxu1 %v818_v0 }
  0x40   :  { %620 = vmatpush3.bf16.msra.mxu0 %v701_v11  ;;  %640 = vmatpush3.bf16.msra.mxu1 %v709_v16 }
  0x41   :  { %621 = vmatprep.subr.bf16.mxu0 %v818_v0  ;;  %641 = vmatprep.subr.bf16.mxu1 %v818_v0 }
  0x44   :  { %622 = vmatpush3.bf16.msra.mxu0 %v702_v13  ;;  %642 = vmatpush3.bf16.msra.mxu1 %v710_v17 }
  0x45   :  { %647 = vmatprep.subr.bf16.mxu0 %v818_v0  ;;  %667 = vmatprep.subr.bf16.mxu1 %v818_v0 }
  0x47   :  { %624 = vmatmul.mubr.bf16.vlgmr.msra.gmra.mxu0 %v61_v15 }
  0x48   :  { %663 = vmatprep.mubr.msk.bf16.mxu0 %vm819_vm0, %v818_v0  ;;  %648 = vmatpush3.bf16.msra.mxu0 %v711_v18 }
  0x49   :  { %649 = vmatprep.subr.bf16.mxu0 %v818_v0 }
  0x4c   :  { %650 = vmatpush3.bf16.msra.mxu0 %v712_v19 }
  0x4d   :  { %651 = vmatprep.subr.bf16.mxu0 %v818_v0 }
  0x50   :  { %652 = vmatpush3.bf16.msra.mxu0 %v713_v20 }
  0x51   :  { %653 = vmatprep.subr.bf16.mxu0 %v818_v0 }
  0x54   :  { %654 = vmatpush3.bf16.msra.mxu0 %v714_v21 }
  0x55   :  { %655 = vmatprep.subr.bf16.mxu0 %v818_v0 }
  0x58   :  { %656 = vmatpush3.bf16.msra.mxu0 %v715_v22 }
  0x59   :  { %657 = vmatprep.subr.bf16.mxu0 %v818_v0 }
  0x5c   :  { %658 = vmatpush3.bf16.msra.mxu0 %v716_v23 }
  0x5d   :  { %659 = vmatprep.subr.bf16.mxu0 %v818_v0 }
  0x60   :  { %660 = vmatpush3.bf16.msra.mxu0 %v717_v32 }
  0x61   :  { %661 = vmatprep.subr.bf16.mxu0 %v818_v0 }
  0x64   :  { %662 = vmatpush3.bf16.msra.mxu0 %v718_v33 }
 0x107   :  { %v167_v25 = vpop.f32.mrf.mxu0 }
 0x108   :  { %v168_v26 = vadd.f32 %v533_v24, %v167_v25 }
 0x109   :  { %v625_v27 = vpop.f32.mrf.mxu0 }
 0x10a   :  { %v173_v28 = vmax.f32 %v168_v26, 0.0 }
 0x10b   :  { %v170_v29 = vpop.f32.mrf.mxu0 }
 0x10c   :  { %v174_v30 = vpack.c.bf16 %v173_v28, %v173_v28 }
 0x10d   :  { %v626_v31 = vpop.f32.mrf.mxu0 }
 0x10e   :  { %644 = vmatmul.mubr.bf16.vlgmr.msra.gmra.mxu1 %v174_v30 }
 0x10f   :  { %683 = vmatprep.mubr.msk.bf16.mxu1 %vm819_vm0, %v818_v0  ;;  %668 = vmatpush3.bf16.msra.mxu1 %v719_v34 }
 0x110   :  { %669 = vmatprep.subr.bf16.mxu1 %v818_v0 }
 0x113   :  { %670 = vmatpush3.bf16.msra.mxu1 %v720_v35 }
 0x114   :  { %671 = vmatprep.subr.bf16.mxu1 %v818_v0 }
 0x117   :  { %672 = vmatpush3.bf16.msra.mxu1 %v721_v36 }
 0x118   :  { %673 = vmatprep.subr.bf16.mxu1 %v818_v0 }
 0x11b   :  { %674 = vmatpush3.bf16.msra.mxu1 %v722_v37 }
 0x11c   :  { %675 = vmatprep.subr.bf16.mxu1 %v818_v0 }
 0x11f   :  { %676 = vmatpush3.bf16.msra.mxu1 %v723_v38 }
 0x120   :  { %677 = vmatprep.subr.bf16.mxu1 %v818_v0 }
 0x123   :  { %678 = vmatpush3.bf16.msra.mxu1 %v724_v39 }
 0x124   :  { %679 = vmatprep.subr.bf16.mxu1 %v818_v0 }
 0x127   :  { %680 = vmatpush3.bf16.msra.mxu1 %v725_v48 }
 0x128   :  { %681 = vmatprep.subr.bf16.mxu1 %v818_v0 }
 0x12b   :  { %682 = vmatpush3.bf16.msra.mxu1 %v726_v49 }
 0x1ce   :  { %v282_v41 = vpop.f32.mrf.mxu1 }
 0x1cf   :  { %v283_v42 = vadd.f32 %v543_v40, %v282_v41 }
 0x1d0   :  { %v645_v43 = vpop.f32.mrf.mxu1 }
 0x1d1   :  { %v288_v44 = vmax.f32 %v283_v42, 0.0 }
 0x1d2   :  { %v285_v45 = vpop.f32.mrf.mxu1 }
 0x1d3   :  { %v289_v46 = vpack.c.bf16 %v288_v44, %v288_v44 }
 0x1d4   :  { %v646_v47 = vpop.f32.mrf.mxu1 }
 0x1d5   :  { %664 = vmatmul.mubr.bf16.vlgmr.msra.gmra.mxu0 %v289_v46 }
 0x295   :  { %v397_v51 = vpop.f32.mrf.mxu0 }
 0x296   :  { %v398_v52 = vadd.f32 %v553_v50, %v397_v51 }
 0x297   :  { %v665_v53 = vpop.f32.mrf.mxu0 }
 0x298   :  { %v403_v54 = vmax.f32 %v398_v52, 0.0 }
 0x299   :  { %v400_v55 = vpop.f32.mrf.mxu0 }
 0x29a   :  { %v404_v56 = vpack.c.bf16 %v403_v54, %v403_v54 }
 0x29b   :  { %v666_v57 = vpop.f32.mrf.mxu0 }
 0x29c   :  { %684 = vmatmul.mubr.bf16.vlgmr.msra.gmra.mxu1 %v404_v56 }
 0x35c   :  { %v510_v59 = vpop.f32.mrf.mxu1 }
 0x35d   :  { %v511_v60 = vadd.f32 %v562_v58, %v510_v59 }
 0x35e   :  { %v685_v61 = vpop.f32.mrf.mxu1 }
 0x35f   :  { %516 = vst [vmem:[#allocation8] sm:$0xff] %v511_v60 }
 0x360   :  { %v513_v62 = vpop.f32.mrf.mxu1 }
 0x361   :  { %798 = shalt.err (!%p795_p5)
}
 0x362   :  { %526 = dma.vmem_to_hbm [thread:$0]  %s524_s16, 128, %s920_s5, [#allocation4]   ;;  %v686_v63 = vpop.f32.mrf.mxu1 }
 0x363   :  { %811 = dma.done.wait [#allocation4], 128  }
 0x364   :  { %812 = vsyncadd [#allocation4], 4294967168 }
 0x365   :  { %530 = vsyncpa [#allocation3], 1 }
 0x366   :  { %531 = vsyncpa [#allocation6], 1 }
 0x367   :  { %532 = vsyncpa [#allocation4], 1 }

</bundles_post_ra>
